<compile_context>
chip_gen: v7x
topology: tpu7x:2x2x1
jax: 0.10.0
libtpu: 0.0.40
codegen_flags: <defaults>
</compile_context>

<pallas_src>
import functools
import math

import jax
import jax.numpy as jnp
from jax import lax
from jax.experimental import pallas as pl
from jax.experimental.pallas import tpu as pltpu

EMBED_DIM = 128
VOCAB_SIZE = 64


def _embed_kernel(ids_ref, tab_ref, out_ref, *, vocab, n_planes):
    # ids_ref: (1, 1, blk) int32 — lane-dense token ids for this block.
    # tab_ref: (n_planes * vocab, D) bf16 — sqrt(D)-scaled table split into
    #          bf16 planes, concatenated along the contraction (K) axis.
    # out_ref: (blk, D) output block.
    blk = out_ref.shape[0]
    kdim = tab_ref.shape[0]

    ids_row = ids_ref[0]                                     # (1, blk) i32
    # Move ids from lanes to sublanes: broadcast to a full 8-sublane tile and
    # do a standard 32-bit XLU transpose, then keep one column.
    ids_rep = jnp.broadcast_to(ids_row, (8, blk))            # (8, blk)
    ids_col = jnp.transpose(ids_rep)[:, 0:1]                 # (blk, 1)

    # One-hot over the concatenated planes: token id hits columns
    # id, id + vocab, ..., id + (n_planes-1)*vocab.
    # NOTE: out-of-range ids (< 0 or >= vocab) are undefined behavior, as in
    # nn.Embedding (which would raise); in-range padded ids are fine.
    col = lax.broadcasted_iota(jnp.int32, (blk, kdim), 1)
    hit = col == ids_col
    for p in range(1, n_planes):
        hit = jnp.logical_or(hit, col == ids_col + p * vocab)
    onehot = jnp.where(hit, 1.0, 0.0).astype(jnp.bfloat16)   # (blk, kdim)

    # Single DEFAULT-precision bf16 MXU pass, f32 accumulation. Each output
    # element is the exact sum of the 3 bf16 plane values => reconstructs the
    # f32-scaled table row to ~1 ulp.
    gathered = jnp.dot(onehot, tab_ref[...],
                       preferred_element_type=jnp.float32)   # (blk, D) f32
    out_ref[...] = gathered.astype(out_ref.dtype)


def _choose_block(n_pad, t_block):
    """Largest multiple-of-8 block that divides n_pad (prefer >=2 grid steps)."""
    limit = min(t_block, n_pad)
    divs = [b for b in range(8, limit + 1, 8) if n_pad % b == 0]
    if not divs:
        return limit  # ragged fallback: pad + slice
    multi = [b for b in divs if n_pad // b >= 2]
    return max(multi) if multi else max(divs)


def embedding_forward(x, table, *, t_block=1024, n_planes=3, out_dtype=None):
    """x: (B, S) int token ids; table: (vocab, D) f32. Returns (B, S, D)."""
    B, S = x.shape
    vocab, D = table.shape
    out_dtype = table.dtype if out_dtype is None else out_dtype
    scale = float(math.sqrt(D))

    n_tok = B * S
    n_pad = ((n_tok + 7) // 8) * 8
    blk = _choose_block(n_pad, t_block)
    n_total = pl.cdiv(n_pad, blk) * blk          # == n_pad whenever blk | n_pad
    n_blocks = n_total // blk

    ids = x.reshape(n_tok).astype(jnp.int32)
    if n_total != n_tok:
        ids = jnp.pad(ids, (0, n_total - n_tok))  # pad with id 0; rows dropped
    ids3d = ids.reshape(n_blocks, 1, blk)         # lane-dense per-block rows

    # Exact 3-plane bf16 split of the sqrt(D)-scaled f32 table.
    scaled = table.astype(jnp.float32) * scale
    planes, resid = [], scaled
    for _ in range(n_planes):
        p = resid.astype(jnp.bfloat16)
        planes.append(p)
        resid = resid - p.astype(jnp.float32)
    tab_planes = jnp.concatenate(planes, axis=0)  # (n_planes*vocab, D) bf16

    out_flat = pl.pallas_call(
        functools.partial(_embed_kernel, vocab=vocab, n_planes=n_planes),
        out_shape=jax.ShapeDtypeStruct((n_total, D), out_dtype),
        grid_spec=pltpu.PrefetchScalarGridSpec(
            num_scalar_prefetch=0,
            grid=(n_blocks,),
            in_specs=[
                # (1, 1, blk) ids block: one contiguous lane-dense row per step.
                pl.BlockSpec((1, 1, blk), lambda i: (i, 0, 0)),
                # Full plane table, constant index -> stays resident in VMEM.
                pl.BlockSpec((n_planes * vocab, D), lambda i: (0, 0)),
            ],
            out_specs=pl.BlockSpec((blk, D), lambda i: (i, 0)),
        ),
        compiler_params=pltpu.CompilerParams(
            dimension_semantics=("parallel",),
        ),
    )(ids3d, tab_planes)

    if n_total != n_tok:
        out_flat = out_flat[:n_tok]
    return out_flat.reshape(B, S, D)


if __name__ == "__main__":
    key = jax.random.PRNGKey(0)
    k_tab, k_ids = jax.random.split(key)

    # Deterministic "weights": nn.Embedding initializes N(0, 1).
    table = jax.random.normal(k_tab, (VOCAB_SIZE, EMBED_DIM), dtype=jnp.float32)

    B, S = 2, 8
    x = jax.random.randint(k_ids, (B, S), 0, VOCAB_SIZE, dtype=jnp.int32)

    out = embedding_forward(x, table)
    out = jax.block_until_ready(out)

    # Reference check against plain JAX gather.
    ref = table[x] * math.sqrt(EMBED_DIM)
    assert out.shape == (B, S, EMBED_DIM)
    assert jnp.allclose(out, ref, atol=1e-6, rtol=1e-6)

    print("KERNEL_OK")
</pallas_src>

<mosaic_0001>
module attributes {stable_mosaic.version = 11 : i64} {
  func.func @_embed_kernel(%arg0: i32, %arg1: memref<1x1x8xi32, #tpu.memory_space<vmem>>, %arg2: memref<192x128xbf16, #tpu.memory_space<vmem>>, %arg3: memref<8x128xf32, #tpu.memory_space<vmem>>) attributes {dimension_semantics = [#tpu.dimension_semantics<parallel>], iteration_bounds = array<i64: 2>, scalar_prefetch = 0 : i64, scratch_operands = 0 : i64, tpu.core_type = #tpu.core_type<tc>, window_params = [{transform_indices = @transform_0, window_bounds = array<i64: 1, 1, 8>}, {pipeline_mode = #tpu.pipeline_mode<synchronous>, transform_indices = @transform_1, window_bounds = array<i64: 192, 128>}, {transform_indices = @transform_2, window_bounds = array<i64: 8, 128>}]} {
    %c0 = arith.constant 0 : index
    %c0_0 = arith.constant 0 : index
    %c0_1 = arith.constant 0 : index
    %0 = vector.load %arg1[%c0, %c0_0, %c0_1] : memref<1x1x8xi32, #tpu.memory_space<vmem>>, vector<1x1x8xi32>
    %1 = vector.shape_cast %0 : vector<1x1x8xi32> to vector<1x8xi32>
    %2 = vector.shape_cast %1 : vector<1x8xi32> to vector<1x8xi32>
    %3 = vector.broadcast %2 : vector<1x8xi32> to vector<8x8xi32>
    %4 = tpu.transpose %3, [1, 0] : vector<8x8xi32> -> vector<8x8xi32>
    %5 = vector.extract_strided_slice %4 {offsets = [0, 0], sizes = [8, 1], strides = [1, 1]} : vector<8x8xi32> to vector<8x1xi32>
    %6 = tpu.iota {dimensions = array<i32: 1>} : vector<8x192xi32>
    %7 = vector.broadcast %5 : vector<8x1xi32> to vector<8x192xi32>
    %8 = arith.cmpi eq, %6, %7 : vector<8x192xi32>
    %c64_i32 = arith.constant 64 : i32
    %9 = vector.broadcast %c64_i32 : i32 to vector<8x1xi32>
    %10 = arith.addi %5, %9 : vector<8x1xi32>
    %11 = vector.broadcast %10 : vector<8x1xi32> to vector<8x192xi32>
    %12 = arith.cmpi eq, %6, %11 : vector<8x192xi32>
    %13 = arith.ori %8, %12 : vector<8x192xi1>
    %c128_i32 = arith.constant 128 : i32
    %14 = vector.broadcast %c128_i32 : i32 to vector<8x1xi32>
    %15 = arith.addi %5, %14 : vector<8x1xi32>
    %16 = vector.broadcast %15 : vector<8x1xi32> to vector<8x192xi32>
    %17 = arith.cmpi eq, %6, %16 : vector<8x192xi32>
    %18 = arith.ori %13, %17 : vector<8x192xi1>
    %cst = arith.constant 1.000000e+00 : f32
    %cst_2 = arith.constant 0.000000e+00 : f32
    %19 = vector.broadcast %cst : f32 to vector<8x192xf32>
    %20 = vector.broadcast %cst_2 : f32 to vector<8x192xf32>
    %21 = arith.select %18, %19, %20 : vector<8x192xi1>, vector<8x192xf32>
    %22 = arith.truncf %21 : vector<8x192xf32> to vector<8x192xbf16>
    %c0_3 = arith.constant 0 : index
    %c0_4 = arith.constant 0 : index
    %23 = vector.load %arg2[%c0_3, %c0_4] : memref<192x128xbf16, #tpu.memory_space<vmem>>, vector<192x128xbf16>
    %cst_5 = arith.constant dense<0.000000e+00> : vector<8x128xf32>
    %24 = tpu.matmul %22, %23, %cst_5 {dimension_numbers = #tpu.dot_dimension_numbers<[1], [0], [0], [1], [0, 0, 1, 1], [], []>} : vector<8x192xbf16>, vector<192x128xbf16>, vector<8x128xf32> -> vector<8x128xf32>
    %c0_6 = arith.constant 0 : index
    %c0_7 = arith.constant 0 : index
    %25 = vector.load %arg3[%c0_6, %c0_7] : memref<8x128xf32, #tpu.memory_space<vmem>>, vector<8x128xf32>
    tpu.vector_store %arg3[%c0_6, %c0_7], %24 {strides = array<i32>} : memref<8x128xf32, #tpu.memory_space<vmem>>, vector<8x128xf32>,
    return
  }
  func.func @transform_0(%arg0: i32) -> (i32, i32, i32) {
    %c0_i32 = arith.constant 0 : i32
    %c0_i32_0 = arith.constant 0 : i32
    %c0_i32_1 = arith.constant 0 : i32
    return %arg0, %c0_i32, %c0_i32_0 : i32, i32, i32
  }
  func.func @transform_1(%arg0: i32) -> (i32, i32) {
    %c0_i32 = arith.constant 0 : i32
    %c0_i32_0 = arith.constant 0 : i32
    %c0_i32_1 = arith.constant 0 : i32
    return %c0_i32, %c0_i32_0 : i32, i32
  }
  func.func @transform_2(%arg0: i32) -> (i32, i32) {
    %c0_i32 = arith.constant 0 : i32
    %c0_i32_0 = arith.constant 0 : i32
    return %arg0, %c0_i32 : i32, i32
  }
}

</mosaic_0001>

<bundles_post_ra>
// kernel: tpu_custom_call.1
= control target key start
LH: loop header
LB: loop body
LE: loop exit
PB: predicated region body
PF: predicated region fallthrough
CT: control target
= control target key end

     0   :  { %7 = vsyncpa [#allocation3], 0  ;;  %s923_s0 = inlined_call_operand.hbm [shape: s32[2,1,8], index: 0, kind: input, shape index: {}]   ;;  %s924_s1 = inlined_call_operand.hbm [shape: bf16[192,128], index: 1, kind: input, shape index: {}]   ;;  %s925_s2 = inlined_call_operand.hbm [shape: f32[16,128], index: 2, kind: output, shape index: {}]  }
   0x1   :  { %9 = vsyncpa [#allocation3 + $0x1], 0 }
   0x2   :  { %10 = vsyncpa [#allocation6], 0 }
   0x3   :  { %11 = vsyncpa [#allocation4], 0 }
   0x4   :  { %13 = vsyncpa [#allocation4 + $0x1], 0  ;;  %s726_s9 = smov 0   ;;  %s728_s10 = smov 0  }
   0x5   :  { %s730_s11 = smov 0   ;;  %s732_s12 = smov 0  }
   0x6 LB: > { %s747_s13 = sadd.s32 4294967295, %s701_s12   ;;  %s469_s14 = sadd.s32 4294967294, %s701_s12   ;;  %s701_s12 = sphi %s732_s12, %s945_s12   ;;  %s697_s11 = sphi %s730_s11, %s944_s11   ;;  %s693_s10 = sphi %s728_s10, %s943_s10   ;;  %s689_s9 = sphi %s726_s9, %s942_s9  }
   0x7   : > { %p39_p0 = scmp.ne.s32.totalorder %s693_s10, %s689_s9  ;;  %p926_p1 = scmp.eq.s32.totalorder %s747_s13, 0 }
   0x8   : > { %p90_p3 = scmp.eq.s32.totalorder %s469_s14, 1  ;;  %p470_p5 = scmp.ge.s32.totalorder %s701_s12, 1 }
   0x9   : > { %p756_p4 = por %p926_p1, %p39_p0  ;;  %p97_p7 = scmp.lt.s32.totalorder %s701_s12, 3 }
   0xa   : > { %p761_p6 = por %p90_p3, %p39_p0  ;;  %s703_s18 = smov [#allocation5]  }
   0xb   : > { %s929_s15 = scalar_select %p756_p4, 1, 0 }
   0xc   : > { %s930_s16 = scalar_select %p761_p6, 1, 0 }
   0xd   : > { %p766_p8 = pnand %p470_p5, %p97_p7  ;;  %s109_s19 = sshll.u32 %s703_s18, 4  ;;  %s770_s19 = int_to_ptr.vmem [resolvable:$true] %s109_s19 }
   0xe   : > { %s782_s21 = sadd.s32 1, %s701_s12   ;;  %s26_s22 = sadd.s32 1, %s697_s11 }
   0xf   : > { %s931_s17 = scalar_select %p766_p8, 1, 0 }
  0x10   : > { %p505_p9 = pneg %p766_p8  ;;  %s23_s23 = ssub.s32 %s701_s12, %s782_s21 }
  0x11   : > { %s573_s26 = scalar_lea.hbm %s924_s1, 1536 }
  0x12   : > { %p777_p11 = pnand %p505_p9, %p926_p1  ;;  %p574_p12 = scmp.ne.s32.totalorder %s924_s1, %s573_s26 }
  0x13   : > { %p580_p5 = scmp.lt.u32.totalorder %s573_s26, %s924_s1 }
  0x14   : > { %p575_p13 = pneg %p777_p11 }
  0x16   : > { %p576_p0 = pnand %p575_p13, %p574_p12 }
  0x18   : > { %p577_p3 = pneg %p576_p0 }
  0x1a   : > { %p582_p7 = pnand %p580_p5, %p577_p3 }
  0x1c   : > { %585 = shalt.err (!%p582_p7)
}
  0x1d   : > { %s586_s3 = scalar_lea.vmem %s770_s19, 1536  ;;  %p594_p2 = scmp.lt.s32.totalorder %s770_s19, %s770_s19 }
  0x1e   : > { %p587_p9 = scmp.ne.s32.totalorder %s770_s19, %s586_s3  ;;  %p595_p6 = scmp.lt.s32.totalorder %s586_s3, %s586_s3 }
  0x20   : > { %p589_p10 = pnand %p587_p9, %p575_p13  ;;  %p596_p4 = por %p595_p6, %p594_p2 }
  0x22   : > { %p590_p1 = pneg %p589_p10 }
  0x24   : > { %p597_p8 = pnand %p596_p4, %p590_p1 }
  0x26   : > { %600 = shalt.err (!%p597_p8)
}
  0x27   : > { %s704_s4 = smov 64   ;;  %s705_s5 = smov 4  }
  0x28   : > { %508 = dma.hbm_to_vmem [thread:$0]  (!%p777_p11), %s924_s1, 1536, %s770_s19, [#allocation6], %s704_s4, %s704_s4, %s705_s5  }
  0x29   : > { %p24_p2 = scmp.eq.s32.totalorder %s23_s23, 0  ;;  %p33_p1 = scmp.ne.s32.totalorder %s697_s11, %s693_s10 }
  0x2a   : > { %p34_p4 = scmp.eq.s32.totalorder %s701_s12, 0  ;;  %p518_p6 = scmp.lt.s32.totalorder %s701_s12, 2 }
  0x2b   : > { %s813_s8 = scalar_select %p24_p2, %s697_s11, %s26_s22  }
  0x2c   : > { %p35_p8 = por %p34_p4, %p33_p1  ;;  %p933_p10 = scmp.eq.s32.totalorder %s747_s13, 1 }
  0x2d   : > { %s123_s18 = sand.u32 1, %s697_s11   ;;  %s473_s24 = sshll.u32 %s701_s12, 4 }
  0x2e   : > { %p817_p12 = por %p933_p10, %p33_p1  ;;  %s826_s26 = scalar_lea.hbm %s923_s0, %s473_s24 }
  0x2f   : > { %s126_s19 = scalar_lea.vmem [#allocation2], %s123_s18  ;;  %p830_p11 = pnand %p518_p6, %p35_p8 }
  0x30   : > { %s133_s22 = sshll.u32 %s126_s19, 4  ;;  %s124_s27 = scalar_lea.sflag [#allocation3], %s123_s18  ;;  %s828_s22 = int_to_ptr.vmem [resolvable:$true] %s133_s22 }
  0x31   : > { %s601_s28 = scalar_lea.hbm %s826_s26, 16  ;;  %p603_p0 = pneg %p830_p11 }
  0x32   : > { %p602_p13 = scmp.ne.s32.totalorder %s826_s26, %s601_s28  ;;  %s606_s3 = scalar_lea.hbm %s923_s0, 32 }
  0x33   : > { %p607_p7 = scmp.lt.u32.totalorder %s826_s26, %s923_s0  ;;  %p608_p9 = scmp.lt.u32.totalorder %s606_s3, %s601_s28 }
  0x34   : > { %p604_p3 = pnand %p603_p0, %p602_p13  ;;  %p610_p1 = scmp.lt.u32.totalorder %s601_s28, %s826_s26 }
  0x35   : > { %p609_p2 = por %p608_p9, %p607_p7 }
  0x36   : > { %p605_p5 = pneg %p604_p3 }
  0x37   : > { %p611_p4 = por %p610_p1, %p609_p2 }
  0x39   : > { %p612_p6 = pnand %p611_p4, %p605_p5 }
  0x3b   : > { %615 = shalt.err (!%p612_p6)
}
  0x3c   : > { %s616_s6 = scalar_lea.vmem %s828_s22, 16  ;;  %s706_s7 = smov [#allocation2]  }
  0x3d   : > { %p617_p8 = scmp.ne.s32.totalorder %s828_s22, %s616_s6  ;;  %s621_s18 = sshll.u32 %s706_s7, 4  ;;  %s622_s18 = int_to_ptr.vmem [resolvable:$false] %s621_s18 }
  0x3e   : > { %s623_s24 = scalar_lea.vmem %s622_s18, 32  ;;  %p624_p3 = scmp.lt.s32.totalorder %s828_s22, %s622_s18 }
  0x3f   : > { %p619_p10 = pnand %p617_p8, %p603_p0  ;;  %p625_p7 = scmp.lt.s32.totalorder %s623_s24, %s616_s6 }
  0x41   : > { %p620_p13 = pneg %p619_p10  ;;  %p626_p9 = por %p625_p7, %p624_p3 }
  0x43   : > { %p627_p2 = pnand %p626_p9, %p620_p13 }
  0x45   : > { %630 = shalt.err (!%p627_p2)
}
  0x46   : > { %512 = dma.hbm_to_vmem [thread:$0]  (!%p830_p11), %s826_s26, 16, %s828_s22, %s124_s27  }
  0x47   : > { %p936_p5 = scmp.ne.s32.totalorder %s931_s17, 0 }
  0x48   : > { %s862_s25 = sand.u32 (!%p936_p5), 1, %s693_s10   ;;  %p937_p0 = scmp.ne.s32.totalorder (!%p936_p5), %s929_s15, 0 }
  0x49   : > { %142 = sbr.rel (%p936_p5) target bundleno = 582 (0x246), region = 28  ;;  %s145_s20 = scalar_lea.sflag (!%p936_p5), [#allocation3], %s862_s25 }
  0x4a   : > { %s147_s19 = scalar_lea.vmem (!%p936_p5), [#allocation2], %s862_s25 }
  0x50   : > { %676 = dma.done.wait (%p937_p0), %s145_s20, 16  }
  0x51   : > { %678 = vsyncadd (%p937_p0), %s145_s20, 4294967280  ;;  %p938_p1 = scmp.eq.s32.totalorder %s747_s13, 0 }
  0x53   : > { %680 = dma.done.wait (%p938_p1), [#allocation6], 1536   ;;  %p939_p11 = pmov %p938_p1 }
  0x54   : > { %v707_v0 = vmov 0   ;;  %v477_v1 = vld [vmem:[%s147_s19] ss:$0 sm:$0xff]  ;;  %v561_v2 = vld [vmem:[#allocation5] sm:$0xff]   ;;  %v562_v3 = vld [vmem:[#allocation5 + $0x8] sm:$0xff]   ;;  %v209_v17 = vlaneseq  ;;  %v708_v23 = vmov 0.0  }
  0x55   : > { %682 = vsyncadd (%p939_p11), [#allocation6], 4294965760  ;;  %560 = vset.pattern.permute.xlu1 %v707_v0  ;;  %337 = vmatprep.subr.bf16.mxu0 %v707_v0  ;;  %v563_v4 = vld [vmem:[#allocation5 + $0x10] sm:$0xff]   ;;  %v564_v5 = vld [vmem:[#allocation5 + $0x18] sm:$0xff]   ;;  %vm333_vm10 = vcmask 523264   ;;  %s476_s15 = sshll.u32 %s862_s25, 3 }
  0x56   : > { %177 = vxpose.xlu0.b32.start.end [1/1] (short) (narrow) %v477_v1, 8  ;;  %338 = vmatpush1.bf16.msra.mxu0 %v561_v2  ;;  %v565_v6 = vld [vmem:[#allocation5 + $0x20] sm:$0xff]   ;;  %v566_v7 = vld [vmem:[#allocation5 + $0x28] sm:$0xff]   ;;  %v567_v8 = vld [vmem:[#allocation5 + $0x30] sm:$0xff]   ;;  %v210_v18 = vand.u32 127, %v209_v17  ;;  %s170_s17 = scalar_lea.vmem [#allocation7], %s476_s15 }
  0x57   : > { %339 = vmatprep.subr.bf16.mxu0 %v707_v0  ;;  %v568_v9 = vld [vmem:[#allocation5 + $0x38] sm:$0xff]   ;;  %v569_v10 = vld [vmem:[#allocation5 + $0x40] sm:$0xff]   ;;  %v570_v12 = vld [vmem:[#allocation5 + $0x48] sm:$0xff]   ;;  %v709_v26 = vmov 1.0|1.0   ;;  %s392_s26 = sshll.u32 %s170_s17, 4  ;;  %s876_s26 = int_to_ptr.vmem [resolvable:$true] %s392_s26 }
  0x58   : > { %v571_v14 = vld [vmem:[#allocation5 + $0x50] sm:$0xff]   ;;  %v572_v16 = vld [vmem:[#allocation5 + $0x58] sm:$0xff]   ;;  %v211_v20 = vadd.s32 128, %v210_v18  ;;  %s494_s22 = sshll.u32 %s747_s13, 7  ;;  %s379_s29 = scalar_lea.sflag [#allocation4], %s862_s25 }
  0x59   : > { %s881_s28 = scalar_lea.hbm %s925_s2, %s494_s22  ;;  %s631_s30 = scalar_lea.vmem %s876_s26, 128 }
  0x5a   : > { %340 = vmatpush1.bf16.msra.mxu0 %v562_v3  ;;  %p632_p4 = scmp.ne.s32.totalorder %s876_s26, %s631_s30  ;;  %s710_s13 = smov [#allocation7]  }
  0x5b   : > { %341 = vmatprep.subr.bf16.mxu0 %v707_v0  ;;  %s635_s3 = sshll.u32 %s710_s13, 4  ;;  %s636_s3 = int_to_ptr.vmem [resolvable:$false] %s635_s3 }
  0x5c   : > { %p633_p6 = pnand %p632_p4, %p817_p12  ;;  %s637_s4 = scalar_lea.vmem %s636_s3, 256 }
  0x5d   : > { %p638_p10 = scmp.lt.s32.totalorder %s876_s26, %s636_s3  ;;  %p639_p13 = scmp.lt.s32.totalorder %s637_s4, %s631_s30 }
  0x5e   : > { %342 = vmatpush1.bf16.msra.mxu0 %v563_v4  ;;  %p634_p8 = pneg %p633_p6 }
  0x5f   : > { %343 = vmatprep.subr.bf16.mxu0 %v707_v0  ;;  %p640_p3 = por %p639_p13, %p638_p10 }
  0x61   : > { %p641_p7 = pnand %p640_p3, %p634_p8 }
  0x62   : > { %344 = vmatpush1.bf16.msra.mxu0 %v564_v5 }
  0x63   : > { %345 = vmatprep.subr.bf16.mxu0 %v707_v0 }
  0x66   : > { %346 = vmatpush1.bf16.msra.mxu0 %v565_v6 }
  0x67   : > { %347 = vmatprep.subr.bf16.mxu0 %v707_v0 }
  0x6a   : > { %348 = vmatpush1.bf16.msra.mxu0 %v566_v7 }
  0x6b   : > { %349 = vmatprep.subr.bf16.mxu0 %v707_v0 }
  0x6e   : > { %350 = vmatpush1.bf16.msra.mxu0 %v567_v8 }
  0x6f   : > { %351 = vmatprep.subr.bf16.mxu0 %v707_v0 }
  0x72   : > { %352 = vmatpush1.bf16.msra.mxu0 %v568_v9 }
  0x73   : > { %353 = vmatprep.subr.bf16.mxu0 %v707_v0 }
  0x76   : > { %354 = vmatpush1.bf16.msra.mxu0 %v569_v10 }
  0x77   : > { %355 = vmatprep.subr.bf16.mxu0 %v707_v0 }
  0x7a   : > { %356 = vmatpush1.bf16.msra.mxu0 %v570_v12 }
  0x7b   : > { %357 = vmatprep.subr.bf16.mxu0 %v707_v0 }
  0x7e   : > { %358 = vmatpush1.bf16.msra.mxu0 %v571_v14 }
  0x7f   : > { %559 = vset.pattern.permute.xlu0 %v707_v0  ;;  %359 = vmatprep.subr.bf16.mxu0 %v707_v0 }
  0x82   : > { %360 = vmatpush1.bf16.msra.mxu0 %v572_v16 }
  0xd6   : > { %v193_v11 = vpop.trf.xlu0 }
  0xd7   : > { %213 = vperm.xlu0 %559, %v193_v11   ;;  %v217_v13 = vadd.s32 64, %v193_v11  ;;  %v225_v15 = vadd.s32 128, %v193_v11 }
  0xd9   : > { %219 = vperm.xlu1 %560, %v217_v13  }
  0xdd   : > { %227 = vperm.xlu1 %560, %v225_v15  }
 0x156   : > { %v214_v21 = vpop.permute.xlu0 %213 }
 0x157   : > { %vm215_vm2 = vcmp.eq.s32.totalorder %v210_v18, %v214_v21  ;;  %vm216_vm3 = vcmp.eq.s32.totalorder %v211_v20, %v214_v21 }
 0x158   : > { %v220_v19 = vpop.permute.xlu1 %219 }
 0x159   : > { %vm221_vm0 = vcmp.eq.s32.totalorder %v210_v18, %v220_v19  ;;  %vm222_vm1 = vcmp.eq.s32.totalorder %v211_v20, %v220_v19 }
 0x15a   : > { %vm223_vm4 = vmor %vm215_vm2, %vm221_vm0 }
 0x15b   : > { %vm224_vm7 = vmor %vm216_vm3, %vm222_vm1 }
 0x15c   : > { %v228_v22 = vpop.permute.xlu1 %227 }
 0x15d   : > { %vm229_vm5 = vcmp.eq.s32.totalorder %v210_v18, %v228_v22  ;;  %vm230_vm6 = vcmp.eq.s32.totalorder %v211_v20, %v228_v22 }
 0x15e   : > { %vm232_vm8 = vmor %vm224_vm7, %vm230_vm6 }
 0x15f   : > { %vm231_vm9 = vmor %vm223_vm4, %vm229_vm5  ;;  %v234_v24 = vsel %vm232_vm8, 1.0, %v708_v23 }
 0x160   : > { %v236_v25 = vpack.c.bf16 %v234_v24, %v234_v24  ;;  %vm491_vm11 = vmpackc.low %vm231_vm9, %vm231_vm9 }
 0x162   : > { %490 = vmatprep.mubr.msk.bf16.mxu0 %vm333_vm10, %v236_v25 }
 0x163   : > { %492 = vmatmul.mubr.msk.bf16.vlgmr.msra.gmra.mrb[0].mxu0 %vm491_vm11, %v709_v26 }
 0x236   : > { %v371_v27 = vpop.f32.mrb[0].mxu0 }
 0x237   : > { %377 = vst [vmem:[%s170_s17] sm:$0xff] %v371_v27  ;;  %v373_v28 = vpop.f32.mrb[1].mxu0 }
 0x238   : > { %v374_v29 = vpop.f32.mrb[2].mxu0 }
 0x239   : > { %644 = shalt.err (!%p641_p7)
}
 0x23a   : > { %s645_s5 = scalar_lea.hbm %s881_s28, 128  ;;  %s649_s18 = scalar_lea.hbm %s925_s2, 256 }
 0x23b   : > { %p646_p9 = scmp.ne.s32.totalorder %s881_s28, %s645_s5  ;;  %p650_p0 = scmp.lt.u32.totalorder %s881_s28, %s925_s2 }
 0x23c   : > { %p651_p1 = scmp.lt.u32.totalorder %s649_s18, %s645_s5  ;;  %p653_p4 = scmp.lt.u32.totalorder %s645_s5, %s881_s28 }
 0x23d   : > { %p647_p2 = pnand %p646_p9, %p817_p12 }
 0x23e   : > { %p652_p11 = por %p651_p1, %p650_p0 }
 0x23f   : > { %p648_p5 = pneg %p647_p2 }
 0x240   : > { %p654_p6 = por %p653_p4, %p652_p11 }
 0x242   : > { %p655_p8 = pnand %p654_p6, %p648_p5 }
 0x244   : > { %658 = shalt.err (!%p655_p8)
}
 0x245   : > { %503 = dma.vmem_to_hbm [thread:$0]  (%p817_p12), %s876_s26, 128, %s881_s28, %s379_s29   ;;  %v375_v30 = vpop.f32.mrb[3].mxu0 }
 0x246 PF: > { %s404_s20 = sand.u32 1, %s689_s9   ;;  %p940_p10 = scmp.ne.s32.totalorder %s930_s16, 0 }
 0x247   : > { %p941_p13 = scmp.ge.s32.totalorder %s701_s12, 2  ;;  %s405_s19 = scalar_lea.sflag [#allocation4], %s404_s20 }
 0x249   : > { %p514_p3 = pnand %p941_p13, %p940_p10 }
 0x24b   : > { %684 = dma.done.wait (!%p514_p3), %s405_s19, 128  }
 0x24c   : > { %686 = vsyncadd (!%p514_p3), %s405_s19, 4294967168  ;;  %p16_p7 = scmp.ge.s32.totalorder %s782_s21, 4   ;;  %s942_s9 = smov %s693_s10 }
 0x24d   : > { %s943_s10 = smov %s697_s11  ;;  %s944_s11 = smov %s813_s8 }
 0x24e   : > { %s945_s12 = smov %s782_s21  ;;  %18 = sbr.rel (!%p16_p7) target bundleno = 6 (0x6), region = 77 }
 0x255   :  { %410 = vsyncpa [#allocation3], 1 }
 0x256   :  { %412 = vsyncpa [#allocation3 + $0x1], 1 }
 0x257   :  { %413 = vsyncpa [#allocation6], 1 }
 0x258   :  { %414 = vsyncpa [#allocation4], 1 }
 0x259   :  { %416 = vsyncpa [#allocation4 + $0x1], 1 }

</bundles_post_ra>
